<compile_context>
chip_gen: v5e
topology: v5e:2x2
jax: 0.10.0
libtpu: 0.0.40
codegen_flags: <defaults>
</compile_context>

<pallas_src>
import functools

import jax
import jax.numpy as jnp
from jax.experimental import pallas as pl
from jax.experimental.pallas import tpu as pltpu


def _se_kernel(x_ref, w1t_ref, b1_ref, w2t_ref, b2_ref, o_ref, *, inv_hw):
    # x_ref / o_ref: (NB, C, HW).  Samples are independent per row, so a
    # ragged tail batch block (uninitialized rows read, writes masked by
    # Pallas) cannot contaminate valid rows.
    x = x_ref[...]

    # --- squeeze: global average pool over spatial lanes (f32 accumulate) ---
    pooled = jnp.sum(x, axis=-1, dtype=jnp.float32) * inv_hw          # (NB, C)

    # --- excite: 1x1 conv (C -> mid) + bias, ReLU6 ---
    h = jnp.dot(pooled, w1t_ref[...],
                preferred_element_type=jnp.float32) + b1_ref[...]     # (NB, mid)
    h = jnp.clip(h, 0.0, 6.0)

    # --- 1x1 conv (mid -> C) + bias, sigmoid ---
    s = jnp.dot(h, w2t_ref[...],
                preferred_element_type=jnp.float32) + b2_ref[...]     # (NB, C)
    s = jax.nn.sigmoid(s)

    # --- scale: broadcast multiply over spatial lanes, in the input dtype ---
    o_ref[...] = (x * s.astype(x.dtype)[:, :, None]).astype(o_ref.dtype)


def _vmem_capacity_bytes():
    """Physical VMEM per TensorCore, with conservative fallbacks."""
    try:
        return int(pltpu.get_tpu_info().vmem_capacity_bytes)
    except Exception:
        pass
    try:
        kind = jax.devices()[0].device_kind.lower()
    except Exception:
        kind = ""
    if "v7" in kind:
        return 64 * 1024 * 1024
    if "v5" in kind or "v6" in kind:
        return 128 * 1024 * 1024
    return 64 * 1024 * 1024  # conservative default


def _is_v7x():
    try:
        return "v7" in jax.devices()[0].device_kind.lower()
    except Exception:
        return False


def _choose_batch_block(n, per_sample_bytes, tile_budget_bytes, min_steps):
    """How many batch samples to pack into one grid step."""
    nb = max(1, tile_budget_bytes // max(1, per_sample_bytes))
    if n > 1 and min_steps > 1:
        # Keep at least `min_steps` grid steps (one per v7x TensorCore).
        nb = min(nb, max(1, -(-n // min_steps)))
    return int(min(nb, n))


@jax.jit
def se_block(x, w1, b1, w2, b2):
    """SEBlock forward.  x: (N, C, H, W); w1: (mid, C); w2: (C, mid)."""
    N, C, H, W = x.shape
    mid = w1.shape[0]
    HW = H * W
    itemsize = jnp.dtype(x.dtype).itemsize

    # Generation-aware VMEM budget: request ~75% of physical VMEM
    # (48 MiB on v7x, 96 MiB on v5e/v6e).  Per-step footprint is roughly
    # 2x double-buffered input tile + 2x output tile + ~1 tile of in-kernel
    # temporaries, so budget each x-tile at ~1/8 of the requested limit.
    vmem_cap = _vmem_capacity_bytes()
    vmem_limit = int(vmem_cap * 3 // 4)
    tile_budget = max(vmem_limit // 8, 1)
    min_steps = 2 if _is_v7x() else 1

    per_sample = C * HW * itemsize
    NB = _choose_batch_block(N, per_sample, tile_budget, min_steps)
    grid = (pl.cdiv(N, NB),)

    # Contiguous trailing-dim collapse: no data movement, no padding.
    x_flat = x.reshape(N, C, HW)

    # Pre-transpose weights so the kernel needs no in-kernel transposes.
    w1_t = w1.T.astype(jnp.float32)                  # (C, mid)
    w2_t = w2.T.astype(jnp.float32)                  # (mid, C)
    b1_row = b1.reshape(1, mid).astype(jnp.float32)
    b2_row = b2.reshape(1, C).astype(jnp.float32)

    kernel = functools.partial(_se_kernel, inv_hw=1.0 / HW)

    cost = pl.CostEstimate(
        flops=2 * N * C * HW + 4 * N * C * mid,
        transcendentals=2 * N * C,
        bytes_accessed=2 * N * C * HW * itemsize,
    )

    out_flat = pl.pallas_call(
        kernel,
        out_shape=jax.ShapeDtypeStruct((N, C, HW), x.dtype),
        grid_spec=pltpu.PrefetchScalarGridSpec(
            num_scalar_prefetch=0,
            grid=grid,
            in_specs=[
                # Last two block dims equal the full (C, HW) extents -> legal
                # regardless of (8, 128) divisibility; batch axis is ragged.
                pl.BlockSpec((NB, C, HW), lambda n: (n, 0, 0)),
                pl.BlockSpec((C, mid), lambda n: (0, 0)),
                pl.BlockSpec((1, mid), lambda n: (0, 0)),
                pl.BlockSpec((mid, C), lambda n: (0, 0)),
                pl.BlockSpec((1, C), lambda n: (0, 0)),
            ],
            out_specs=pl.BlockSpec((NB, C, HW), lambda n: (n, 0, 0)),
        ),
        compiler_params=pltpu.CompilerParams(
            dimension_semantics=("parallel",),
            vmem_limit_bytes=vmem_limit,
        ),
        cost_estimate=cost,
    )(x_flat, w1_t, b1_row, w2_t, b2_row)

    return out_flat.reshape(N, C, H, W)


def _reference(x, w1, b1, w2, b2):
    # Pure-JAX reference mirroring the PyTorch module.
    pooled = jnp.mean(x, axis=(2, 3), keepdims=True)            # (N, C, 1, 1)
    h = jnp.einsum('mc,nchw->nmhw', w1, pooled) + b1[None, :, None, None]
    h = jnp.clip(h, 0.0, 6.0)
    s = jnp.einsum('cm,nmhw->nchw', w2, h) + b2[None, :, None, None]
    s = jax.nn.sigmoid(s)
    return x * s


if __name__ == "__main__":
    # SEBlock(channels=32, reduction=16) -> mid_channels = 2
    N, C, H, W = 2, 32, 16, 16
    reduction = 16
    mid = C // reduction

    key = jax.random.PRNGKey(0)
    kx, k1, kb1, k2, kb2 = jax.random.split(key, 5)

    x = jax.random.normal(kx, (N, C, H, W), dtype=jnp.float32)
    # conv1x1 weights (kernel_size=1) as dense matrices, deterministic init.
    w1 = jax.random.normal(k1, (mid, C), dtype=jnp.float32) * 0.1
    b1 = jax.random.normal(kb1, (mid,), dtype=jnp.float32) * 0.1
    w2 = jax.random.normal(k2, (C, mid), dtype=jnp.float32) * 0.1
    b2 = jax.random.normal(kb2, (C,), dtype=jnp.float32) * 0.1

    out = jax.block_until_ready(se_block(x, w1, b1, w2, b2))
    ref = _reference(x, w1, b1, w2, b2)

    assert out.shape == (N, C, H, W)
    assert jnp.allclose(out, ref, atol=1e-5, rtol=1e-5), "mismatch vs reference"

    print("KERNEL_OK")
</pallas_src>

<mosaic_0001>
module attributes {stable_mosaic.version = 11 : i64} {
  func.func @_se_kernel(%arg0: i32, %arg1: memref<2x32x256xf32, #tpu.memory_space<vmem>>, %arg2: memref<32x2xf32, #tpu.memory_space<vmem>>, %arg3: memref<1x2xf32, #tpu.memory_space<vmem>>, %arg4: memref<2x32xf32, #tpu.memory_space<vmem>>, %arg5: memref<1x32xf32, #tpu.memory_space<vmem>>, %arg6: memref<2x32x256xf32, #tpu.memory_space<vmem>>) attributes {dimension_semantics = [#tpu.dimension_semantics<parallel>], iteration_bounds = array<i64: 1>, scalar_prefetch = 0 : i64, scratch_operands = 0 : i64, tpu.core_type = #tpu.core_type<tc>, window_params = [{transform_indices = @transform_0, window_bounds = array<i64: 2, 32, 256>}, {pipeline_mode = #tpu.pipeline_mode<synchronous>, transform_indices = @transform_1, window_bounds = array<i64: 32, 2>}, {pipeline_mode = #tpu.pipeline_mode<synchronous>, transform_indices = @transform_2, window_bounds = array<i64: 1, 2>}, {pipeline_mode = #tpu.pipeline_mode<synchronous>, transform_indices = @transform_3, window_bounds = array<i64: 2, 32>}, {pipeline_mode = #tpu.pipeline_mode<synchronous>, transform_indices = @transform_4, window_bounds = array<i64: 1, 32>}, {transform_indices = @transform_5, window_bounds = array<i64: 2, 32, 256>}]} {
    %c0 = arith.constant 0 : index
    %c0_0 = arith.constant 0 : index
    %c0_1 = arith.constant 0 : index
    %0 = vector.load %arg1[%c0, %c0_0, %c0_1] : memref<2x32x256xf32, #tpu.memory_space<vmem>>, vector<2x32x256xf32>
    %cst = arith.constant dense<0.000000e+00> : vector<2x32xf32>
    %1 = vector.multi_reduction <add>, %0, %cst [2] : vector<2x32x256xf32> to vector<2x32xf32>
    %cst_2 = arith.constant 3.906250e-03 : f32
    %2 = vector.broadcast %cst_2 : f32 to vector<2x32xf32>
    %3 = arith.mulf %1, %2 : vector<2x32xf32>
    %c0_3 = arith.constant 0 : index
    %c0_4 = arith.constant 0 : index
    %4 = vector.load %arg2[%c0_3, %c0_4] : memref<32x2xf32, #tpu.memory_space<vmem>>, vector<32x2xf32>
    %cst_5 = arith.constant dense<0.000000e+00> : vector<2x2xf32>
    %5 = tpu.matmul %3, %4, %cst_5 {dimension_numbers = #tpu.dot_dimension_numbers<[1], [0], [0], [1], [0, 0, 1, 1], [], []>} : vector<2x32xf32>, vector<32x2xf32>, vector<2x2xf32> -> vector<2x2xf32>
    %c0_6 = arith.constant 0 : index
    %c0_7 = arith.constant 0 : index
    %6 = vector.load %arg3[%c0_6, %c0_7] : memref<1x2xf32, #tpu.memory_space<vmem>>, vector<1x2xf32>
    %7 = vector.broadcast %6 : vector<1x2xf32> to vector<2x2xf32>
    %8 = arith.addf %5, %7 : vector<2x2xf32>
    %cst_8 = arith.constant 0.000000e+00 : f32
    %cst_9 = arith.constant 6.000000e+00 : f32
    %9 = vector.broadcast %cst_8 : f32 to vector<2x2xf32>
    %10 = arith.maximumf %9, %8 : vector<2x2xf32>
    %11 = vector.broadcast %cst_9 : f32 to vector<2x2xf32>
    %12 = arith.minimumf %11, %10 : vector<2x2xf32>
    %c0_10 = arith.constant 0 : index
    %c0_11 = arith.constant 0 : index
    %13 = vector.load %arg4[%c0_10, %c0_11] : memref<2x32xf32, #tpu.memory_space<vmem>>, vector<2x32xf32>
    %cst_12 = arith.constant dense<0.000000e+00> : vector<2x32xf32>
    %14 = tpu.matmul %12, %13, %cst_12 {dimension_numbers = #tpu.dot_dimension_numbers<[1], [0], [0], [1], [0, 0, 1, 1], [], []>} : vector<2x2xf32>, vector<2x32xf32>, vector<2x32xf32> -> vector<2x32xf32>
    %c0_13 = arith.constant 0 : index
    %c0_14 = arith.constant 0 : index
    %15 = vector.load %arg5[%c0_13, %c0_14] : memref<1x32xf32, #tpu.memory_space<vmem>>, vector<1x32xf32>
    %16 = vector.broadcast %15 : vector<1x32xf32> to vector<2x32xf32>
    %17 = arith.addf %14, %16 : vector<2x32xf32>
    %18 = arith.negf %17 : vector<2x32xf32>
    %19 = math.exp %18 : vector<2x32xf32>
    %cst_15 = arith.constant 1.000000e+00 : f32
    %20 = vector.broadcast %cst_15 : f32 to vector<2x32xf32>
    %21 = arith.addf %20, %19 : vector<2x32xf32>
    %22 = arith.divf %20, %21 : vector<2x32xf32>
    %23 = vector.shape_cast %22 : vector<2x32xf32> to vector<2x32x1xf32>
    %24 = vector.broadcast %23 : vector<2x32x1xf32> to vector<2x32x256xf32>
    %25 = arith.mulf %0, %24 : vector<2x32x256xf32>
    %c0_16 = arith.constant 0 : index
    %c0_17 = arith.constant 0 : index
    %c0_18 = arith.constant 0 : index
    %26 = vector.load %arg6[%c0_16, %c0_17, %c0_18] : memref<2x32x256xf32, #tpu.memory_space<vmem>>, vector<2x32x256xf32>
    tpu.vector_store %arg6[%c0_16, %c0_17, %c0_18], %25 {strides = array<i32>} : memref<2x32x256xf32, #tpu.memory_space<vmem>>, vector<2x32x256xf32>,
    return
  }
  func.func @transform_0(%arg0: i32) -> (i32, i32, i32) {
    %c0_i32 = arith.constant 0 : i32
    %c0_i32_0 = arith.constant 0 : i32
    %c0_i32_1 = arith.constant 0 : i32
    return %arg0, %c0_i32, %c0_i32_0 : i32, i32, i32
  }
  func.func @transform_1(%arg0: i32) -> (i32, i32) {
    %c0_i32 = arith.constant 0 : i32
    %c0_i32_0 = arith.constant 0 : i32
    %c0_i32_1 = arith.constant 0 : i32
    return %c0_i32, %c0_i32_0 : i32, i32
  }
  func.func @transform_2(%arg0: i32) -> (i32, i32) {
    %c0_i32 = arith.constant 0 : i32
    %c0_i32_0 = arith.constant 0 : i32
    %c0_i32_1 = arith.constant 0 : i32
    return %c0_i32, %c0_i32_0 : i32, i32
  }
  func.func @transform_3(%arg0: i32) -> (i32, i32) {
    %c0_i32 = arith.constant 0 : i32
    %c0_i32_0 = arith.constant 0 : i32
    %c0_i32_1 = arith.constant 0 : i32
    return %c0_i32, %c0_i32_0 : i32, i32
  }
  func.func @transform_4(%arg0: i32) -> (i32, i32) {
    %c0_i32 = arith.constant 0 : i32
    %c0_i32_0 = arith.constant 0 : i32
    %c0_i32_1 = arith.constant 0 : i32
    return %c0_i32, %c0_i32_0 : i32, i32
  }
  func.func @transform_5(%arg0: i32) -> (i32, i32, i32) {
    %c0_i32 = arith.constant 0 : i32
    %c0_i32_0 = arith.constant 0 : i32
    %c0_i32_1 = arith.constant 0 : i32
    return %arg0, %c0_i32, %c0_i32_0 : i32, i32, i32
  }
}

</mosaic_0001>

<bundles_post_ra>
// kernel: se_block.1
= control target key start
LH: loop header
LB: loop body
LE: loop exit
PB: predicated region body
PF: predicated region fallthrough
CT: control target
= control target key end

     0   :  { %v84_v31 = vlaneseq  ;;  %vm89_vm0 = vcmask 130112   ;;  %vm93_vm1 = vcmask 195712   ;;  %vm97_vm2 = vcmask 261312   ;;  %s501_s0 = inlined_call_operand.vmem [shape: f32[2,32,256], index: 0, kind: input, shape index: {}]   ;;  %s502_s2 = inlined_call_operand.vmem [shape: f32[1,2], index: 2, kind: input, shape index: {}]   ;;  %s503_s1 = inlined_call_operand.vmem [shape: f32[32,2], index: 1, kind: input, shape index: {}]   ;;  %s504_s4 = inlined_call_operand.vmem [shape: f32[1,32], index: 4, kind: input, shape index: {}]   ;;  %s505_s3 = inlined_call_operand.vmem [shape: f32[2,32], index: 3, kind: input, shape index: {}]   ;;  %s506_s5 = inlined_call_operand.vmem [shape: f32[2,32,256], index: 5, kind: output, shape index: {}]  }
   0x1   :  { %v323_v0 = vld [vmem:[%s501_s0 + $0x40] sm:$0xff]  ;;  %v328_v1 = vld [vmem:[%s501_s0 + $0x48] sm:$0xff]  ;;  %v359_v9 = vld [vmem:[%s501_s0 + $0x50] sm:$0xff]  ;;  %vm106_vm3 = vcmask 1041409   ;;  %vm108_vm4 = vcmask 261120   ;;  %vm142_vm5 = vcmask 1041408  }
   0x2   :  { %v333_v2 = vld [vmem:[%s501_s0] sm:$0xff]  ;;  %v48_v3 = vadd.f32 %v328_v1, %v323_v0  ;;  %v340_v4 = vld [vmem:[%s501_s0 + $0x8] sm:$0xff]  ;;  %v364_v10 = vld [vmem:[%s501_s0 + $0x58] sm:$0xff]  ;;  %v85_v32 = vand.u32 127, %v84_v31  ;;  %vm138_vm6 = vcmask 15360  }
   0x3   :  { %v345_v5 = vld [vmem:[%s501_s0 + $0x20] sm:$0xff]  ;;  %v350_v6 = vld [vmem:[%s501_s0 + $0x28] sm:$0xff]  ;;  %v36_v7 = vadd.f32 %v340_v4, %v333_v2  ;;  %v369_v11 = vld [vmem:[%s501_s0 + $0x10] sm:$0xff]  ;;  %v51_v15 = vadd.f32 %v364_v10, %v359_v9 }
   0x4   :  { %v42_v8 = vadd.f32 %v350_v6, %v345_v5  ;;  %49 = vadd.xlane.f32.xlu1 %v48_v3  ;;  %v374_v12 = vld [vmem:[%s501_s0 + $0x18] sm:$0xff]  ;;  %v379_v13 = vld [vmem:[%s501_s0 + $0x60] sm:$0xff]  ;;  %v384_v14 = vld [vmem:[%s501_s0 + $0x68] sm:$0xff]  ;;  %v87_v34 = vadd.s32 4294967288, %v85_v32  ;;  %v91_v43 = vadd.s32 4294967280, %v85_v32  ;;  %v95_v47 = vadd.s32 4294967272, %v85_v32 }
   0x5   :  { %37 = vadd.xlane.f32.xlu0 %v36_v7  ;;  %v39_v16 = vadd.f32 %v374_v12, %v369_v11  ;;  %v54_v17 = vadd.f32 %v384_v14, %v379_v13  ;;  %v395_v18 = vld [vmem:[%s501_s0 + $0x70] sm:$0xff]  ;;  %v400_v19 = vld [vmem:[%s501_s0 + $0x78] sm:$0xff]  ;;  %v69_v26 = vld [vmem:[%s503_s1 + $0x8] sm:$0xff] }
   0x6   :  { %43 = vadd.xlane.f32.xlu2 %v42_v8  ;;  %v405_v20 = vld [vmem:[%s501_s0 + $0x30] sm:$0xff]  ;;  %v410_v21 = vld [vmem:[%s501_s0 + $0x38] sm:$0xff]  ;;  %v57_v22 = vadd.f32 %v400_v19, %v395_v18  ;;  %v68_v27 = vld [vmem:[%s503_s1] sm:$0xff] }
   0x7   :  { %v45_v23 = vadd.f32 %v410_v21, %v405_v20  ;;  %v71_v24 = vld [vmem:[%s503_s1 + $0x18] sm:$0xff]  ;;  %v70_v25 = vld [vmem:[%s503_s1 + $0x10] sm:$0xff]  ;;  %v133_v3 = vld [vmem:[%s505_s3] sm:$0x3] }
   0x8   :  { %123 = vmatpush.msra.mxu0 %v71_v24  ;;  %272 = vmatpush.msk.msra.mxu1 %vm142_vm5, %v133_v3  ;;  %v284_v7 = vld [vmem:[%s502_s2] ss:$0 sm:$0xff] }
   0xa   :  { %124 = vmatpush.msra.mxu0 %v70_v25  ;;  %v285_v25 = vld [vmem:[%s504_s4] ss:$0 sm:$0xff] }
   0xc   :  { %52 = vadd.xlane.f32.xlu1 %v51_v15  ;;  %125 = vmatpush.msra.mxu0 %v69_v26 }
   0xd   :  { %40 = vadd.xlane.f32.xlu0 %v39_v16 }
   0xe   :  { %55 = vadd.xlane.f32.xlu2 %v54_v17  ;;  %126 = vmatpush.msra.mxu0 %v68_v27 }
  0x14   :  { %58 = vadd.xlane.f32.xlu1 %v57_v22  ;;  %v187_v22 = vshrl.u32 %v84_v31, 7 }
  0x15   :  { %46 = vadd.xlane.f32.xlu0 %v45_v23 }
  0x16   :  { %275 = vset.pattern.permute.xlu2 %v187_v22  ;;  %v200_v23 = vadd.s32 16, %v187_v22  ;;  %v194_v24 = vadd.s32 8, %v187_v22 }
  0x18   :  { %277 = vset.pattern.permute.xlu1 %v200_v23  ;;  %276 = vset.pattern.permute.xlu0 %v194_v24 }
  0x77   :  { %v50_v28 = vpop.xlane.xlu1 %49 }
  0x78   :  { %v38_v29 = vpop.xlane.xlu0 %37  ;;  %v64_v39 = vmul.f32 0.00390625, %v50_v28 }
  0x79   :  { %v44_v30 = vpop.xlane.xlu2 %43  ;;  %v60_v40 = vmul.f32 0.00390625, %v38_v29 }
  0x7a   :  { %v99_v45 = vperm.slane %v64_v39, %v85_v32  ;;  %v62_v46 = vmul.f32 0.00390625, %v44_v30 }
  0x7b   :  { %v86_v48 = vperm.slane %v60_v40, %v85_v32 }
  0x7c   :  { %v92_v56 = vperm.slane %v62_v46, %v91_v43 }
  0x7f   :  { %v53_v33 = vpop.xlane.xlu1 %52 }
  0x80   :  { %v65_v35 = vmul.f32 0.00390625, %v53_v33  ;;  %v41_v36 = vpop.xlane.xlu0 %40 }
  0x81   :  { %v56_v37 = vpop.xlane.xlu2 %55  ;;  %v61_v38 = vmul.f32 0.00390625, %v41_v36 }
  0x82   :  { %v66_v41 = vmul.f32 0.00390625, %v56_v37  ;;  %v100_v42 = vperm.slane %v65_v35, %v87_v34 }
  0x83   :  { %v88_v44 = vperm.slane %v61_v38, %v87_v34 }
  0x84   :  { %v102_v49 = vperm.slane %v66_v41, %v91_v43  ;;  %v101_v51 = vsel %vm89_vm0, %v100_v42, %v99_v45  ;;  %v206_v42 = vadd.s32 24, %v187_v22 }
  0x85   :  { %v90_v54 = vsel %vm89_vm0, %v88_v44, %v86_v48 }
  0x86   :  { %v103_v59 = vsel %vm93_vm1, %v102_v49, %v101_v51  ;;  %v94_v60 = vsel %vm93_vm1, %v92_v56, %v90_v54 }
  0x87   :  { %v59_v50 = vpop.xlane.xlu1 %58 }
  0x88   :  { %v67_v52 = vmul.f32 0.00390625, %v59_v50  ;;  %v47_v53 = vpop.xlane.xlu0 %46 }
  0x89   :  { %v63_v55 = vmul.f32 0.00390625, %v47_v53 }
  0x8a   :  { %v104_v57 = vperm.slane %v67_v52, %v95_v47 }
  0x8b   :  { %v96_v58 = vperm.slane %v63_v55, %v95_v47 }
  0x8c   :  { %v105_v61 = vsel %vm97_vm2, %v104_v57, %v103_v59 }
  0x8d   :  { %v98_v62 = vsel %vm97_vm2, %v96_v58, %v94_v60 }
  0x8e   :  { %v107_v63 = vsel %vm106_vm3, %v105_v61, %v98_v62 }
  0x8f   :  { %271 = vmatmul.msk.f32.vlgmr.msra.gmra.mxu0 %vm108_vm4, %v107_v63 }
 0x10c   :  { %v128_v8 = vpop.f32.mrf.mxu0 }
 0x10d   :  { %v129_v15 = vadd.f32 %v284_v7, %v128_v8 }
 0x10f   :  { %v131_v16 = vmax.f32 %v129_v15, 0.0 }
 0x111   :  { %v132_v17 = vmin.f32 %v131_v16, 6.0 }
 0x113   :  { %273 = vmatmul.msk.f32.vlgmr.msra.gmra.mxu1 %vm138_vm6, %v132_v17 }
 0x190   :  { %v163_v26 = vpop.f32.mrf.mxu1 }
 0x191   :  { %v164_v27 = vadd.f32 %v285_v25, %v163_v26 }
 0x193   :  { %v274_v28 = vmul.f32 -1.442695, %v164_v27 }
 0x195   :  { %286 = vpow2.f32 %v274_v28 }
 0x19b   :  { %v287_v29 = vpop.eup %286 }
 0x19c   :  { %v169_v30 = vadd.f32 1.0, %v287_v29 }
 0x19e   :  { %288 = vrcp.f32 %v169_v30  ;;  %v181_v31 = vand.u32 2147483648, %v169_v30  ;;  %v179_v36 = vand.u32 2147483647, %v169_v30  ;;  %vm175_vm8 = vweird.f32 %v169_v30 }
 0x1a0   :  { %v182_v38 = vor.u32 1.1754944e-38, %v181_v31  ;;  %vm180_vm10 = vcmp.eq.f32.partialorder %v179_v36, 8.507059e+37 }
 0x1a4   :  { %v289_v32 = vpop.eup %288 }
 0x1a5   :  { %v171_v33 = vmul.f32 %v289_v32, %v169_v30  ;;  %vm176_vm7 = vweird.f32 %v289_v32 }
 0x1a6   :  { %vm177_vm9 = vmor %vm175_vm8, %vm176_vm7 }
 0x1a7   :  { %v172_v34 = vsub.f32 1.0, %v171_v33 }
 0x1a9   :  { %v173_v35 = vmul.f32 %v289_v32, %v172_v34 }
 0x1ab   :  { %v174_v37 = vadd.f32 %v289_v32, %v173_v35 }
 0x1ad   :  { %v178_v39 = vsel %vm177_vm9, %v289_v32, %v174_v37 }
 0x1ae   :  { %v183_v40 = vsel %vm180_vm10, %v182_v38, %v178_v39 }
 0x1af   :  { %v185_v41 = vperm.slane %v183_v40, 0  ;;  %v210_v43 = vperm.slane %v183_v40, 1 }
 0x1b1   :  { %202 = vperm.xlu1 %277, %v185_v41   ;;  %196 = vperm.xlu0 %276, %v185_v41  }
 0x1b2   :  { %190 = vperm.xlu2 %275, %v185_v41  }
 0x1b9   :  { %280 = vset.pattern.permute.xlu1 %v194_v24  ;;  %283 = vset.pattern.permute.xlu0 %v206_v42 }
 0x1ba   :  { %278 = vset.pattern.permute.xlu2 %v206_v42 }
 0x1c1   :  { %221 = vperm.xlu1 %280, %v210_v43  }
 0x1c2   :  { %208 = vperm.xlu2 %278, %v185_v41  }
 0x1c9   :  { %282 = vset.pattern.permute.xlu1 %v206_v42 }
 0x1ca   :  { %279 = vset.pattern.permute.xlu2 %v187_v22 }
 0x1d1   :  { %233 = vperm.xlu1 %282, %v210_v43  }
 0x1d2   :  { %215 = vperm.xlu2 %279, %v210_v43  }
 0x1da   :  { %281 = vset.pattern.permute.xlu2 %v200_v23 }
 0x1e2   :  { %227 = vperm.xlu2 %281, %v210_v43  }
 0x20c   :  { %v191_v44 = vpop.permute.xlu2 %190 }
 0x20d   :  { %v235_v45 = vmul.f32 %v191_v44, %v333_v2  ;;  %v236_v46 = vmul.f32 %v191_v44, %v340_v4 }
 0x20f   :  { %251 = vst [vmem:[%s506_s5] sm:$0xff] %v235_v45 }
 0x210   :  { %252 = vst [vmem:[%s506_s5 + $0x8] sm:$0xff] %v236_v46 }
 0x21c   :  { %v209_v47 = vpop.permute.xlu2 %208 }
 0x21d   :  { %v241_v48 = vmul.f32 %v209_v47, %v405_v20  ;;  %v242_v49 = vmul.f32 %v209_v47, %v410_v21 }
 0x21f   :  { %257 = vst [vmem:[%s506_s5 + $0x30] sm:$0xff] %v241_v48 }
 0x220   :  { %258 = vst [vmem:[%s506_s5 + $0x38] sm:$0xff] %v242_v49 }
 0x223   :  { %v203_v2 = vpop.permute.xlu1 %202  ;;  %v197_v4 = vpop.permute.xlu0 %196 }
 0x224   :  { %v239_v50 = vmul.f32 %v203_v2, %v345_v5  ;;  %v240_v51 = vmul.f32 %v203_v2, %v350_v6  ;;  %v237_v52 = vmul.f32 %v197_v4, %v369_v11  ;;  %v238_v20 = vmul.f32 %v197_v4, %v374_v12 }
 0x226   :  { %255 = vst [vmem:[%s506_s5 + $0x20] sm:$0xff] %v239_v50 }
 0x227   :  { %256 = vst [vmem:[%s506_s5 + $0x28] sm:$0xff] %v240_v51 }
 0x228   :  { %253 = vst [vmem:[%s506_s5 + $0x10] sm:$0xff] %v237_v52 }
 0x229   :  { %254 = vst [vmem:[%s506_s5 + $0x18] sm:$0xff] %v238_v20 }
 0x22c   :  { %v216_v5 = vpop.permute.xlu2 %215 }
 0x22d   :  { %v243_v6 = vmul.f32 %v216_v5, %v323_v0  ;;  %v244_v11 = vmul.f32 %v216_v5, %v328_v1 }
 0x22f   :  { %259 = vst [vmem:[%s506_s5 + $0x40] sm:$0xff] %v243_v6 }
 0x230   :  { %260 = vst [vmem:[%s506_s5 + $0x48] sm:$0xff] %v244_v11 }
 0x233   :  { %v222_v12 = vpop.permute.xlu1 %221 }
 0x234   :  { %v245_v21 = vmul.f32 %v222_v12, %v359_v9  ;;  %v246_v53 = vmul.f32 %v222_v12, %v364_v10 }
 0x236   :  { %261 = vst [vmem:[%s506_s5 + $0x50] sm:$0xff] %v245_v21 }
 0x237   :  { %262 = vst [vmem:[%s506_s5 + $0x58] sm:$0xff] %v246_v53 }
 0x23c   :  { %v228_v0 = vpop.permute.xlu2 %227 }
 0x23d   :  { %v247_v1 = vmul.f32 %v228_v0, %v379_v13  ;;  %v248_v54 = vmul.f32 %v228_v0, %v384_v14 }
 0x23f   :  { %263 = vst [vmem:[%s506_s5 + $0x60] sm:$0xff] %v247_v1 }
 0x240   :  { %264 = vst [vmem:[%s506_s5 + $0x68] sm:$0xff] %v248_v54 }
 0x243   :  { %v234_v9 = vpop.permute.xlu1 %233 }
 0x244   :  { %v249_v10 = vmul.f32 %v234_v9, %v395_v18  ;;  %v250_v55 = vmul.f32 %v234_v9, %v400_v19 }
 0x246   :  { %265 = vst [vmem:[%s506_s5 + $0x70] sm:$0xff] %v249_v10 }
 0x247   :  { %266 = vst [vmem:[%s506_s5 + $0x78] sm:$0xff] %v250_v55 }

</bundles_post_ra>
